<compile_context>
chip_gen: v7x
topology: tpu7x:2x2x1
jax: 0.10.0
libtpu: 0.0.40
codegen_flags: <defaults>
</compile_context>

<pallas_src>
import jax
import jax.numpy as jnp
from jax.experimental import pallas as pl
from jax.experimental.pallas import tpu as pltpu


_LANE = 128
_SLAB_BYTES = 4 << 20           # target bytes per x_grad pipeline buffer
_V5E_SCOPED_DEFAULT = 14 << 20  # stay under v5e's 16 MiB scoped default before raising
_VMEM_CAP = 48 << 20            # never request past ~48 MiB (v7x physical VMEM = 64 MiB)


def _round_up(x, m):
    return -(-x // m) * m


def _gp_forward_kernel(xg_ref, v_ref, yhat_ref, out_ref, acc_ref):
    """grid = (num_cores, steps): axis 0 = P shard ("parallel"), axis 1 = reduction ("arbitrary").

    Accumulates sum_p x_grad[:, p] * v[p] into a lane-wide [M, 128] f32 VMEM
    scratch; finalizes (single XLU lane reduce + y_hat add + one narrow store)
    only on each shard's last reduction step.
    """
    c = pl.program_id(0)
    p = pl.program_id(1)

    @pl.when(p == 0)
    def _():
        acc_ref[...] = jnp.zeros_like(acc_ref)

    n_chunks = xg_ref.shape[-1] // _LANE  # static (block shape)

    # Fold the (M, tp) tile into the accumulator 128 lanes at a time: bf16->f32
    # upcast + VPU multiply-add only; no cross-lane work in the steady state.
    @pl.loop(0, n_chunks, unroll=(n_chunks <= 8))
    def _(i):
        off = pl.multiple_of(i * _LANE, _LANE)
        xg = xg_ref[:, pl.ds(off, _LANE)].astype(jnp.float32)   # [M, 128]
        vv = v_ref[:, pl.ds(off, _LANE)]                        # [1, 128] f32 (broadcasts)
        acc_ref[...] += xg * vv

    @pl.when(p == pl.num_programs(1) - 1)
    def _():
        partial = jnp.sum(acc_ref[...], axis=-1, keepdims=True)           # [M, 1]
        partial = jnp.where(c == 0, partial + yhat_ref[...], partial)     # add y_hat exactly once
        out_ref[0] = partial.astype(out_ref.dtype)


def gaussian_fit_forward(x_grad, v_row, y_hat, *, tp=None, num_cores=1,
                         x_dtype=jnp.bfloat16):
    """out = y_hat + x_grad @ v  with v = grads.T @ W precomputed at fit time.

    Algebraically identical (up to summation order and the optional bf16
    streaming of x_grad) to torch's  y_hat + (x_grad @ grads.T) @ W.

    num_cores: pass 2 on v7x (2 TensorCores/chip) to split the P reduction across
    cores; keep 1 on v5e/v6e.  Correct on any chip (leading grid axis is
    "parallel"; each shard writes its own partial-output slot, summed here).
    """
    M, P = x_grad.shape
    assert v_row.shape == (1, P)
    assert y_hat.shape == (M, 1)

    itemsize = jnp.dtype(x_dtype).itemsize
    sublane = 8 * (4 // itemsize)              # VMEM sublane packing: 8 rows f32, 16 rows bf16
    rows_pad = _round_up(M, sublane)

    p_core = _round_up(-(-P // num_cores), _LANE)   # per-shard extent, 128-aligned
    if tp is None:
        # Auto-size the reduction tile to a few-MiB slab per buffer so the kernel
        # runs near the HBM roofline without blowing the scoped VMEM budget
        # (binding constraint: v7x 64 MiB physical / 32 MiB scoped; v5e 16 MiB scoped).
        tp = max(_LANE, (_SLAB_BYTES // (rows_pad * itemsize)) // _LANE * _LANE)
    else:
        tp = _round_up(int(tp), _LANE)
    tp = min(tp, p_core)

    steps = -(-p_core // tp)
    p_padded = num_cores * steps * tp
    if p_padded != P:                       # zero-pad P (zeros contribute 0 to the sum)
        x_grad = jnp.pad(x_grad, ((0, 0), (0, p_padded - P)))
        v_row = jnp.pad(v_row, ((0, 0), (0, p_padded - P)))
    x_grad = x_grad.astype(x_dtype)         # stream narrow; accumulate in f32
    v_row = v_row.astype(jnp.float32)
    y_hat = y_hat.astype(jnp.float32)

    # Deeper pipelining on the x_grad stream once there are enough steps.
    xg_spec_kwargs = dict(pipeline_mode=pl.Buffered(3)) if steps >= 3 else {}
    n_bufs_x = 3 if steps >= 3 else 2

    # Scoped-VMEM footprint estimate -> raise the limit only when needed.
    est = (n_bufs_x * rows_pad * tp * itemsize   # x_grad pipeline buffers
           + 2 * 8 * tp * 4                      # v_row buffers (f32, 8-sublane padded)
           + M * _LANE * 4 + (1 << 20))          # accumulator + slack
    vmem_limit = None
    if est > _V5E_SCOPED_DEFAULT:
        vmem_limit = min(max(est + (4 << 20), 32 << 20), _VMEM_CAP)

    out_parts = pl.pallas_call(
        _gp_forward_kernel,
        out_shape=jax.ShapeDtypeStruct((num_cores, M, 1), jnp.float32),
        grid_spec=pltpu.PrefetchScalarGridSpec(
            num_scalar_prefetch=0,
            grid=(num_cores, steps),
            in_specs=[
                pl.BlockSpec((M, tp), lambda c, p: (0, c * steps + p),
                             **xg_spec_kwargs),                 # x_grad tile (bf16 stream)
                pl.BlockSpec((1, tp), lambda c, p: (0, c * steps + p)),  # v row tile (f32)
                pl.BlockSpec((M, 1), lambda c, p: (0, 0)),       # y_hat (resident)
            ],
            out_specs=pl.BlockSpec((1, M, 1), lambda c, p: (c, 0, 0)),  # per-shard slot
            scratch_shapes=[pltpu.VMEM((M, _LANE), jnp.float32)],        # lane-wide accumulator
        ),
        compiler_params=pltpu.CompilerParams(
            dimension_semantics=("parallel", "arbitrary"),
            vmem_limit_bytes=vmem_limit),
    )(x_grad, v_row, y_hat)

    return out_parts.sum(axis=0)            # [M, 1]


# ----------------------------- glue (plain JAX) -----------------------------

def model_apply(theta, x):
    """Synthetic scalar-output linear model f(x) = x @ theta."""
    return x @ theta  # [B, 1]


def get_gradient_linear(x):
    """get_gradient(model, x, ..., kernel='direct') for the linear model:
    per-sample Jacobian d f(x_i) / d theta = x_i."""
    return x  # [B, P]


def fit(theta, x_train, y_train, noise_var):
    """GaussianFit.fit(): NTK Gram matrix + linear solve, plus the forward-path
    reassociation v = grads.T @ W (runs once at fit time)."""
    y_hat_train = model_apply(theta, x_train)                  # [N, 1]
    grads = get_gradient_linear(x_train)                       # [N, P]
    cov = grads @ grads.T                                       # [N, N]
    cov = cov + noise_var * jnp.eye(cov.shape[0], dtype=cov.dtype)
    # TODO(synk): torch.linalg.solve (fit-time, not forward) stays in plain JAX.
    W = jnp.linalg.solve(cov, y_train - y_hat_train)            # [N, 1]
    v_row = W.T @ grads                                         # [1, P] lane-dense
    return grads, W, v_row


if __name__ == "__main__":
    key = jax.random.PRNGKey(0)
    k_theta, k_xtr, k_ytr, k_xte = jax.random.split(key, 4)

    D = 640     # flattened param dim P (= feature dim of the linear model)
    N = 64      # training-set size
    M = 8       # test batch size
    NOISE_VAR = 0.1

    theta = 0.05 * jax.random.normal(k_theta, (D, 1), jnp.float32)
    x_train = jax.random.normal(k_xtr, (N, D), jnp.float32)
    y_train = jax.random.normal(k_ytr, (N, 1), jnp.float32)
    x_test = jax.random.normal(k_xte, (M, D), jnp.float32)

    # fit() -> self.grads, self.W (+ precomputed v = grads.T @ W)
    grads, W, v_row = fit(theta, x_train, y_train, NOISE_VAR)

    # forward(x_test)
    x_grad = get_gradient_linear(x_test)        # [M, D]
    y_hat = model_apply(theta, x_test)          # [M, 1]

    # Run A: auto-sized tile (single slab), single shard.
    out_a = jax.block_until_ready(gaussian_fit_forward(x_grad, v_row, y_hat))
    # Run B: forced small tile -> 3 reduction steps (exercises Buffered(3)),
    # two P shards with per-shard partial outputs (v7x 2-TC layout), and
    # zero-padding of P (640 -> 768).
    out_b = jax.block_until_ready(
        gaussian_fit_forward(x_grad, v_row, y_hat, tp=128, num_cores=2))

    # Exact torch-order reference (f32).
    ref = y_hat + (x_grad @ grads.T) @ W
    # Reference with the same bf16 streaming of x_grad (isolates kernel logic
    # from the intentional bf16 / reassociation tradeoff).
    xg_q = x_grad.astype(jnp.bfloat16).astype(jnp.float32)
    ref_q = y_hat + xg_q @ v_row.T

    for name, out in (("A", out_a), ("B", out_b)):
        assert out.shape == (M, 1) and out.dtype == jnp.float32
        err_q = jnp.max(jnp.abs(out - ref_q))
        assert jnp.allclose(out, ref_q, atol=1e-4, rtol=1e-4), \
            f"run {name} vs bf16 reference: max abs err {err_q}"
        err = jnp.max(jnp.abs(out - ref))
        assert jnp.allclose(out, ref, atol=2e-2, rtol=2e-2), \
            f"run {name} vs exact reference: max abs err {err}"

    print("KERNEL_OK")
</pallas_src>

<mosaic_0001>
module attributes {stable_mosaic.version = 11 : i64} {
  func.func @_gp_forward_kernel(%arg0: i32, %arg1: i32, %arg2: memref<8x640xbf16, #tpu.memory_space<vmem>>, %arg3: memref<1x640xf32, #tpu.memory_space<vmem>>, %arg4: memref<8x1xf32, #tpu.memory_space<vmem>>, %arg5: memref<1x8x1xf32, #tpu.memory_space<vmem>>, %arg6: memref<8x128xf32, #tpu.memory_space<vmem>>) attributes {dimension_semantics = [#tpu.dimension_semantics<parallel>, #tpu.dimension_semantics<arbitrary>], iteration_bounds = array<i64: 1, 1>, scalar_prefetch = 0 : i64, scratch_operands = 1 : i64, tpu.core_type = #tpu.core_type<tc>, window_params = [{transform_indices = @transform_0, window_bounds = array<i64: 8, 640>}, {transform_indices = @transform_1, window_bounds = array<i64: 1, 640>}, {pipeline_mode = #tpu.pipeline_mode<synchronous>, transform_indices = @transform_2, window_bounds = array<i64: 8, 1>}, {transform_indices = @transform_3, window_bounds = array<i64: 1, 8, 1>}]} {
    %c0_i32 = arith.constant 0 : i32
    %0 = arith.cmpi eq, %arg1, %c0_i32 : i32
    %1 = arith.extui %0 : i1 to i32
    %c0_i32_0 = arith.constant 0 : i32
    %2 = arith.cmpi ne, %1, %c0_i32_0 : i32
    scf.if %2 {
      %cst = arith.constant 0.000000e+00 : f32
      %76 = vector.broadcast %cst : f32 to vector<8x128xf32>
      %c0_47 = arith.constant 0 : index
      %c0_48 = arith.constant 0 : index
      %77 = vector.load %arg6[%c0_47, %c0_48] : memref<8x128xf32, #tpu.memory_space<vmem>>, vector<8x128xf32>
      tpu.vector_store %arg6[%c0_47, %c0_48], %76 {strides = array<i32>} : memref<8x128xf32, #tpu.memory_space<vmem>>, vector<8x128xf32>,
    } else {
    }
    %c0_i32_1 = arith.constant 0 : i32
    %c1_i32 = arith.constant 1 : i32
    %3 = arith.muli %c0_i32_1, %c1_i32 : i32
    %c0_i32_2 = arith.constant 0 : i32
    %4 = arith.addi %c0_i32_2, %3 : i32
    %c128_i32 = arith.constant 128 : i32
    %5 = arith.muli %4, %c128_i32 : i32
    %6 = tpu.assume_multiple %5, 128 : i32
    %c0 = arith.constant 0 : index
    %7 = arith.index_cast %6 : i32 to index
    %8 = vector.load %arg2[%c0, %7] : memref<8x640xbf16, #tpu.memory_space<vmem>>, vector<8x128xbf16>
    %9 = arith.extf %8 : vector<8x128xbf16> to vector<8x128xf32>
    %c0_3 = arith.constant 0 : index
    %10 = arith.index_cast %6 : i32 to index
    %11 = vector.load %arg3[%c0_3, %10] : memref<1x640xf32, #tpu.memory_space<vmem>>, vector<1x128xf32>
    %c0_4 = arith.constant 0 : index
    %c0_5 = arith.constant 0 : index
    %12 = vector.load %arg6[%c0_4, %c0_5] : memref<8x128xf32, #tpu.memory_space<vmem>>, vector<8x128xf32>
    %13 = vector.broadcast %11 : vector<1x128xf32> to vector<8x128xf32>
    %14 = arith.mulf %9, %13 : vector<8x128xf32>
    %15 = arith.addf %12, %14 : vector<8x128xf32>
    %c0_6 = arith.constant 0 : index
    %c0_7 = arith.constant 0 : index
    %16 = vector.load %arg6[%c0_6, %c0_7] : memref<8x128xf32, #tpu.memory_space<vmem>>, vector<8x128xf32>
    tpu.vector_store %arg6[%c0_6, %c0_7], %15 {strides = array<i32>} : memref<8x128xf32, #tpu.memory_space<vmem>>, vector<8x128xf32>,
    %c1_i32_8 = arith.constant 1 : i32
    %c1_i32_9 = arith.constant 1 : i32
    %17 = arith.muli %c1_i32_8, %c1_i32_9 : i32
    %c0_i32_10 = arith.constant 0 : i32
    %18 = arith.addi %c0_i32_10, %17 : i32
    %c128_i32_11 = arith.constant 128 : i32
    %19 = arith.muli %18, %c128_i32_11 : i32
    %20 = tpu.assume_multiple %19, 128 : i32
    %c0_12 = arith.constant 0 : index
    %21 = arith.index_cast %20 : i32 to index
    %22 = vector.load %arg2[%c0_12, %21] : memref<8x640xbf16, #tpu.memory_space<vmem>>, vector<8x128xbf16>
    %23 = arith.extf %22 : vector<8x128xbf16> to vector<8x128xf32>
    %c0_13 = arith.constant 0 : index
    %24 = arith.index_cast %20 : i32 to index
    %25 = vector.load %arg3[%c0_13, %24] : memref<1x640xf32, #tpu.memory_space<vmem>>, vector<1x128xf32>
    %c0_14 = arith.constant 0 : index
    %c0_15 = arith.constant 0 : index
    %26 = vector.load %arg6[%c0_14, %c0_15] : memref<8x128xf32, #tpu.memory_space<vmem>>, vector<8x128xf32>
    %27 = vector.broadcast %25 : vector<1x128xf32> to vector<8x128xf32>
    %28 = arith.mulf %23, %27 : vector<8x128xf32>
    %29 = arith.addf %26, %28 : vector<8x128xf32>
    %c0_16 = arith.constant 0 : index
    %c0_17 = arith.constant 0 : index
    %30 = vector.load %arg6[%c0_16, %c0_17] : memref<8x128xf32, #tpu.memory_space<vmem>>, vector<8x128xf32>
    tpu.vector_store %arg6[%c0_16, %c0_17], %29 {strides = array<i32>} : memref<8x128xf32, #tpu.memory_space<vmem>>, vector<8x128xf32>,
    %c2_i32 = arith.constant 2 : i32
    %c1_i32_18 = arith.constant 1 : i32
    %31 = arith.muli %c2_i32, %c1_i32_18 : i32
    %c0_i32_19 = arith.constant 0 : i32
    %32 = arith.addi %c0_i32_19, %31 : i32
    %c128_i32_20 = arith.constant 128 : i32
    %33 = arith.muli %32, %c128_i32_20 : i32
    %34 = tpu.assume_multiple %33, 128 : i32
    %c0_21 = arith.constant 0 : index
    %35 = arith.index_cast %34 : i32 to index
    %36 = vector.load %arg2[%c0_21, %35] : memref<8x640xbf16, #tpu.memory_space<vmem>>, vector<8x128xbf16>
    %37 = arith.extf %36 : vector<8x128xbf16> to vector<8x128xf32>
    %c0_22 = arith.constant 0 : index
    %38 = arith.index_cast %34 : i32 to index
    %39 = vector.load %arg3[%c0_22, %38] : memref<1x640xf32, #tpu.memory_space<vmem>>, vector<1x128xf32>
    %c0_23 = arith.constant 0 : index
    %c0_24 = arith.constant 0 : index
    %40 = vector.load %arg6[%c0_23, %c0_24] : memref<8x128xf32, #tpu.memory_space<vmem>>, vector<8x128xf32>
    %41 = vector.broadcast %39 : vector<1x128xf32> to vector<8x128xf32>
    %42 = arith.mulf %37, %41 : vector<8x128xf32>
    %43 = arith.addf %40, %42 : vector<8x128xf32>
    %c0_25 = arith.constant 0 : index
    %c0_26 = arith.constant 0 : index
    %44 = vector.load %arg6[%c0_25, %c0_26] : memref<8x128xf32, #tpu.memory_space<vmem>>, vector<8x128xf32>
    tpu.vector_store %arg6[%c0_25, %c0_26], %43 {strides = array<i32>} : memref<8x128xf32, #tpu.memory_space<vmem>>, vector<8x128xf32>,
    %c3_i32 = arith.constant 3 : i32
    %c1_i32_27 = arith.constant 1 : i32
    %45 = arith.muli %c3_i32, %c1_i32_27 : i32
    %c0_i32_28 = arith.constant 0 : i32
    %46 = arith.addi %c0_i32_28, %45 : i32
    %c128_i32_29 = arith.constant 128 : i32
    %47 = arith.muli %46, %c128_i32_29 : i32
    %48 = tpu.assume_multiple %47, 128 : i32
    %c0_30 = arith.constant 0 : index
    %49 = arith.index_cast %48 : i32 to index
    %50 = vector.load %arg2[%c0_30, %49] : memref<8x640xbf16, #tpu.memory_space<vmem>>, vector<8x128xbf16>
    %51 = arith.extf %50 : vector<8x128xbf16> to vector<8x128xf32>
    %c0_31 = arith.constant 0 : index
    %52 = arith.index_cast %48 : i32 to index
    %53 = vector.load %arg3[%c0_31, %52] : memref<1x640xf32, #tpu.memory_space<vmem>>, vector<1x128xf32>
    %c0_32 = arith.constant 0 : index
    %c0_33 = arith.constant 0 : index
    %54 = vector.load %arg6[%c0_32, %c0_33] : memref<8x128xf32, #tpu.memory_space<vmem>>, vector<8x128xf32>
    %55 = vector.broadcast %53 : vector<1x128xf32> to vector<8x128xf32>
    %56 = arith.mulf %51, %55 : vector<8x128xf32>
    %57 = arith.addf %54, %56 : vector<8x128xf32>
    %c0_34 = arith.constant 0 : index
    %c0_35 = arith.constant 0 : index
    %58 = vector.load %arg6[%c0_34, %c0_35] : memref<8x128xf32, #tpu.memory_space<vmem>>, vector<8x128xf32>
    tpu.vector_store %arg6[%c0_34, %c0_35], %57 {strides = array<i32>} : memref<8x128xf32, #tpu.memory_space<vmem>>, vector<8x128xf32>,
    %c4_i32 = arith.constant 4 : i32
    %c1_i32_36 = arith.constant 1 : i32
    %59 = arith.muli %c4_i32, %c1_i32_36 : i32
    %c0_i32_37 = arith.constant 0 : i32
    %60 = arith.addi %c0_i32_37, %59 : i32
    %c128_i32_38 = arith.constant 128 : i32
    %61 = arith.muli %60, %c128_i32_38 : i32
    %62 = tpu.assume_multiple %61, 128 : i32
    %c0_39 = arith.constant 0 : index
    %63 = arith.index_cast %62 : i32 to index
    %64 = vector.load %arg2[%c0_39, %63] : memref<8x640xbf16, #tpu.memory_space<vmem>>, vector<8x128xbf16>
    %65 = arith.extf %64 : vector<8x128xbf16> to vector<8x128xf32>
    %c0_40 = arith.constant 0 : index
    %66 = arith.index_cast %62 : i32 to index
    %67 = vector.load %arg3[%c0_40, %66] : memref<1x640xf32, #tpu.memory_space<vmem>>, vector<1x128xf32>
    %c0_41 = arith.constant 0 : index
    %c0_42 = arith.constant 0 : index
    %68 = vector.load %arg6[%c0_41, %c0_42] : memref<8x128xf32, #tpu.memory_space<vmem>>, vector<8x128xf32>
    %69 = vector.broadcast %67 : vector<1x128xf32> to vector<8x128xf32>
    %70 = arith.mulf %65, %69 : vector<8x128xf32>
    %71 = arith.addf %68, %70 : vector<8x128xf32>
    %c0_43 = arith.constant 0 : index
    %c0_44 = arith.constant 0 : index
    %72 = vector.load %arg6[%c0_43, %c0_44] : memref<8x128xf32, #tpu.memory_space<vmem>>, vector<8x128xf32>
    tpu.vector_store %arg6[%c0_43, %c0_44], %71 {strides = array<i32>} : memref<8x128xf32, #tpu.memory_space<vmem>>, vector<8x128xf32>,
    %c5_i32 = arith.constant 5 : i32
    %c0_i32_45 = arith.constant 0 : i32
    %73 = arith.cmpi eq, %arg1, %c0_i32_45 : i32
    %74 = arith.extui %73 : i1 to i32
    %c0_i32_46 = arith.constant 0 : i32
    %75 = arith.cmpi ne, %74, %c0_i32_46 : i32
    scf.if %75 {
      %c0_47 = arith.constant 0 : index
      %c0_48 = arith.constant 0 : index
      %76 = vector.load %arg6[%c0_47, %c0_48] : memref<8x128xf32, #tpu.memory_space<vmem>>, vector<8x128xf32>
      %cst = arith.constant dense<0.000000e+00> : vector<8xf32>
      %77 = vector.multi_reduction <add>, %76, %cst [1] : vector<8x128xf32> to vector<8xf32>
      %78 = vector.shape_cast %77 : vector<8xf32> to vector<8x1xf32>
      %c0_i32_49 = arith.constant 0 : i32
      %79 = arith.cmpi eq, %arg0, %c0_i32_49 : i32
      %c0_50 = arith.constant 0 : index
      %c0_51 = arith.constant 0 : index
      %80 = vector.load %arg4[%c0_50, %c0_51] : memref<8x1xf32, #tpu.memory_space<vmem>>, vector<8x1xf32>
      %81 = arith.addf %78, %80 : vector<8x1xf32>
      %82 = arith.select %79, %81, %78 : vector<8x1xf32>
      %c0_52 = arith.constant 0 : index
      %c0_53 = arith.constant 0 : index
      %c0_54 = arith.constant 0 : index
      %83 = vector.load %arg5[%c0_52, %c0_53, %c0_54] : memref<1x8x1xf32, #tpu.memory_space<vmem>>, vector<1x8x1xf32>
      %84 = vector.shape_cast %83 : vector<1x8x1xf32> to vector<8x1xf32>
      %85 = vector.shape_cast %82 : vector<8x1xf32> to vector<1x8x1xf32>
      tpu.vector_store %arg5[%c0_52, %c0_53, %c0_54], %85 {strides = array<i32>} : memref<1x8x1xf32, #tpu.memory_space<vmem>>, vector<1x8x1xf32>,
    } else {
    }
    return
  }
  func.func @transform_0(%arg0: i32, %arg1: i32) -> (i32, i32) {
    %c1_i32 = arith.constant 1 : i32
    %0 = arith.muli %arg0, %c1_i32 : i32
    %1 = arith.addi %0, %arg1 : i32
    %c0_i32 = arith.constant 0 : i32
    %c0_i32_0 = arith.constant 0 : i32
    return %c0_i32, %1 : i32, i32
  }
  func.func @transform_1(%arg0: i32, %arg1: i32) -> (i32, i32) {
    %c1_i32 = arith.constant 1 : i32
    %0 = arith.muli %arg0, %c1_i32 : i32
    %1 = arith.addi %0, %arg1 : i32
    %c0_i32 = arith.constant 0 : i32
    %c0_i32_0 = arith.constant 0 : i32
    return %c0_i32, %1 : i32, i32
  }
  func.func @transform_2(%arg0: i32, %arg1: i32) -> (i32, i32) {
    %c0_i32 = arith.constant 0 : i32
    %c0_i32_0 = arith.constant 0 : i32
    %c0_i32_1 = arith.constant 0 : i32
    return %c0_i32, %c0_i32_0 : i32, i32
  }
  func.func @transform_3(%arg0: i32, %arg1: i32) -> (i32, i32, i32) {
    %c0_i32 = arith.constant 0 : i32
    %c0_i32_0 = arith.constant 0 : i32
    %c0_i32_1 = arith.constant 0 : i32
    return %arg0, %c0_i32, %c0_i32_0 : i32, i32, i32
  }
}

</mosaic_0001>

<bundles_post_ra>
// kernel: tpu_custom_call.1
= control target key start
LH: loop header
LB: loop body
LE: loop exit
PB: predicated region body
PF: predicated region fallthrough
CT: control target
= control target key end

     0   :  { %8 = vsyncpa [#allocation4], 0  ;;  %s186_s12 = smov [#allocation3]   ;;  %s240_s0 = inlined_call_operand.hbm [shape: bf16[8,640], index: 0, kind: input, shape index: {}]   ;;  %s241_s1 = inlined_call_operand.vmem [shape: f32[1,640], index: 1, kind: input, shape index: {}]   ;;  %s242_s2 = inlined_call_operand.vmem [shape: f32[8,1], index: 2, kind: input, shape index: {}]   ;;  %s243_s3 = inlined_call_operand.vmem [shape: f32[1,8,1], index: 3, kind: output, shape index: {}]  }
   0x1   :  { %s19_s13 = sshll.u32 %s186_s12, 4  ;;  %s162_s16 = scalar_lea.hbm %s240_s0, 320  ;;  %s20_s13 = int_to_ptr.vmem [resolvable:$true] %s19_s13 }
   0x2   :  { %p163_p0 = scmp.ne.s32.totalorder %s240_s0, %s162_s16  ;;  %p166_p1 = scmp.lt.u32.totalorder %s162_s16, %s240_s0 }
   0x4   :  { %p168_p2 = pnand %p166_p1, %p163_p0 }
   0x6   :  { %171 = shalt.err (!%p168_p2)
}
   0x7   :  { %s172_s21 = scalar_lea.vmem %s20_s13, 320  ;;  %p177_p4 = scmp.lt.s32.totalorder %s20_s13, %s20_s13 }
   0x8   :  { %p173_p3 = scmp.ne.s32.totalorder %s20_s13, %s172_s21  ;;  %p178_p5 = scmp.lt.s32.totalorder %s172_s21, %s172_s21 }
   0xa   :  { %p179_p6 = por %p178_p5, %p177_p4 }
   0xc   :  { %p180_p7 = pnand %p179_p6, %p173_p3 }
   0xe   :  { %183 = shalt.err (!%p180_p7)
}
   0xf   :  { %22 = dma.hbm_to_vmem [thread:$0]  %s240_s0, 320, %s20_s13, [#allocation4]  }
  0x10   :  { %184 = dma.done.wait [#allocation4], 320  }
  0x11   :  { %185 = vsyncadd [#allocation4], 4294966976  ;;  %v56_v0 = vld [vmem:[#allocation3] sm:$0xff]   ;;  %v85_v5 = vld [vmem:[#allocation3 + $0x8] sm:$0xff]   ;;  %vm142_vm0 = vcmask 7168  }
  0x12   :  { %v152_v1 = vld [vmem:[%s241_s1] ss:$0 sm:$0xff]  ;;  %v154_v2 = vld [vmem:[%s241_s1 + $0x1] ss:$0 sm:$0xff]  ;;  %v57_v3 = vunpack.c.l.bf16 %v56_v0  ;;  %v71_v4 = vunpack.c.h.bf16 %v56_v0  ;;  %v156_v6 = vld [vmem:[%s241_s1 + $0x2] ss:$0 sm:$0xff]  ;;  %v86_v7 = vunpack.c.l.bf16 %v85_v5  ;;  %v101_v8 = vunpack.c.h.bf16 %v85_v5 }
  0x13   :  { %v158_v9 = vld [vmem:[%s241_s1 + $0x3] ss:$0 sm:$0xff]  ;;  %v115_v10 = vld [vmem:[#allocation3 + $0x10] sm:$0xf]  ;;  %v160_v15 = vld [vmem:[%s241_s1 + $0x4] ss:$0 sm:$0xff] }
  0x14   :  { %v66_v11 = vmul.f32 %v152_v1, %v57_v3  ;;  %v81_v12 = vmul.f32 %v154_v2, %v71_v4  ;;  %v116_v13 = vunpack.c.l.bf16 %v115_v10  ;;  %v96_v14 = vmul.f32 %v156_v6, %v86_v7  ;;  %v136_v22 = vld [vmem:[%s242_s2] sm:$0xff] }
  0x15   :  { %v111_v17 = vmul.f32 %v158_v9, %v101_v8 }
  0x16   :  { %v82_v16 = vadd.f32 %v81_v12, %v66_v11  ;;  %v126_v19 = vmul.f32 %v160_v15, %v116_v13 }
  0x18   :  { %v97_v18 = vadd.f32 %v96_v14, %v82_v16 }
  0x1a   :  { %v112_v20 = vadd.f32 %v111_v17, %v97_v18 }
  0x1c   :  { %v127_v21 = vadd.f32 %v126_v19, %v112_v20 }
  0x1e   :  { %133 = vadd.xlane.f32.xlu0 %v127_v21 }
  0xab   :  { %v134_v23 = vpop.xlane.xlu0 %133 }
  0xac   :  { %v137_v24 = vadd.f32 %v136_v22, %v134_v23 }
  0xae   :  { %143 = vst.msk [vmem:[%s243_s3] sm:$0xff] %vm142_vm0, %v137_v24 }
  0xaf   :  { %148 = vsyncpa [#allocation4], 1 }

</bundles_post_ra>
